<compile_context>
chip_gen: v5e
topology: v5e:2x2
jax: 0.10.0
libtpu: 0.0.40
codegen_flags: <defaults>
</compile_context>

<pallas_src>
import jax
import jax.numpy as jnp
from jax import lax
from jax.experimental import pallas as pl
from jax.experimental.pallas import tpu as pltpu


# ---------------------------------------------------------------------------
# Hardware-aware budgets / tiling helpers
# ---------------------------------------------------------------------------

def _hw_budgets():
    """Return (vmem_limit_bytes, block_budget_bytes), generation aware.

    v7x has 64 MiB physical VMEM per TensorCore; v5e/v6e have 128 MiB.
    The normalize pass keeps ~5 blocks resident (3 input buffers + double
    buffered output); the stats pass keeps 3 input buffers + 2 full-width f32
    accumulators.  These budgets keep both passes comfortably inside VMEM.
    """
    cap = 128 * 1024 * 1024
    try:
        info = pltpu.get_tpu_info()
        cap = int(getattr(info, "vmem_capacity_bytes", cap))
    except Exception:
        pass
    if cap <= 64 * 1024 * 1024:                      # v7x-class
        return 48 * 1024 * 1024, 4 * 1024 * 1024
    return 64 * 1024 * 1024, 8 * 1024 * 1024         # v5e / v6e


def _fold_factor(c, dhw, itemsize):
    """Sublane fold factor k: fold DHW into the channel axis when C is small
    so each (C*k, tile) block fills full vregs (8 rows f32, 16 bf16, ...)."""
    packing = max(1, 4 // max(int(itemsize), 1))
    sublanes = 8 * packing
    if c >= sublanes:
        return 1
    k = max(1, sublanes // c)
    k = min(k, max(1, dhw // 128))   # keep at least one 128-lane tile per row
    return k


def _pick_tile(dhw_f, c_f, itemsize, block_budget_bytes):
    """Largest lane tile that is a multiple of 128, divides dhw_f evenly, and
    keeps one (1, c_f, tile) block under block_budget_bytes (dtype aware)."""
    bytes_per_lane = max(c_f, 1) * int(itemsize)
    max_tile = max(128, (block_budget_bytes // bytes_per_lane) // 128 * 128)
    tile = min(dhw_f, max_tile)
    tile = max(128, (tile // 128) * 128)
    while dhw_f % tile:
        tile -= 128
    return tile


# ---------------------------------------------------------------------------
# Kernels
# ---------------------------------------------------------------------------

def _stats_kernel(x_ref, sum_ref, sumsq_ref, sacc_ref, sqacc_ref):
    """Lane-parallel per-channel sum / sum(x*x) accumulation.

    x_ref:      (1, Cf, T) input block for (sample n, slab p, lane-tile t)
    sum_ref:    (1, Cf, 1) f32 output (written once, at the last tile)
    sumsq_ref:  (1, Cf, 1) f32 output (written once, at the last tile)
    sacc_ref:   (Cf, T)    f32 VMEM scratch (full-width, VPU-only adds)
    sqacc_ref:  (Cf, T)    f32 VMEM scratch
    """
    t = pl.program_id(2)

    @pl.when(t == 0)
    def _():
        sacc_ref[...] = jnp.zeros_like(sacc_ref)
        sqacc_ref[...] = jnp.zeros_like(sqacc_ref)

    x = x_ref[0].astype(jnp.float32)          # (Cf, T)
    sacc_ref[...] += x                        # pure VPU, no cross-lane work
    sqacc_ref[...] += x * x

    @pl.when(t == pl.num_programs(2) - 1)
    def _():
        # exactly one cross-lane (XLU) reduce per (n, slab)
        sum_ref[0] = jnp.sum(sacc_ref[...], axis=-1, keepdims=True)
        sumsq_ref[0] = jnp.sum(sqacc_ref[...], axis=-1, keepdims=True)


def _normalize_kernel(scale_ref, shift_ref, x_ref, o_ref):
    """y = x * scale + shift with per-(folded-)channel scale/shift."""
    x = x_ref[0].astype(jnp.float32)          # (Cf, T)
    y = x * scale_ref[...] + shift_ref[...]
    o_ref[0] = y.astype(o_ref.dtype)


# ---------------------------------------------------------------------------
# pallas_call wrappers
# ---------------------------------------------------------------------------

def _streaming_spec(c_f, tile, index_map, total_steps):
    """Input BlockSpec for the streamed (1, Cf, tile) blocks; use a deeper
    pipeline only when the grid is deep enough to benefit."""
    if total_steps >= 3:
        return pl.BlockSpec((1, c_f, tile), index_map,
                            pipeline_mode=pl.Buffered(3))
    return pl.BlockSpec((1, c_f, tile), index_map)


def _batch_stats(x3, tile, split_p, vmem_limit):
    """Per-(sample, slab) per-folded-channel sum and sum(x*x) over DHW."""
    n, c_f, dhw_f = x3.shape
    n_tiles = dhw_f // tile
    tiles_per_p = n_tiles // split_p
    total_steps = n * split_p * tiles_per_p

    x_idx = lambda i, p, t: (i, 0, p * tiles_per_p + t)
    out_idx = lambda i, p, t: (i * split_p + p, 0, 0)

    return pl.pallas_call(
        _stats_kernel,
        out_shape=(
            jax.ShapeDtypeStruct((n * split_p, c_f, 1), jnp.float32),
            jax.ShapeDtypeStruct((n * split_p, c_f, 1), jnp.float32),
        ),
        grid_spec=pltpu.PrefetchScalarGridSpec(
            num_scalar_prefetch=0,
            grid=(n, split_p, tiles_per_p),
            in_specs=[_streaming_spec(c_f, tile, x_idx, total_steps)],
            out_specs=(
                pl.BlockSpec((1, c_f, 1), out_idx),
                pl.BlockSpec((1, c_f, 1), out_idx),
            ),
            scratch_shapes=[pltpu.VMEM((c_f, tile), jnp.float32),
                            pltpu.VMEM((c_f, tile), jnp.float32)],
        ),
        compiler_params=pltpu.CompilerParams(
            dimension_semantics=("parallel", "parallel", "arbitrary"),
            vmem_limit_bytes=vmem_limit,
        ),
    )(x3)


def _normalize(x3, scale_f, shift_f, tile, vmem_limit):
    """y = x * scale + shift, tiled over (N, DHW), fully parallel grid."""
    n, c_f, dhw_f = x3.shape
    n_tiles = dhw_f // tile
    total_steps = n * n_tiles

    x_idx = lambda i, t: (i, 0, t)

    return pl.pallas_call(
        _normalize_kernel,
        out_shape=jax.ShapeDtypeStruct((n, c_f, dhw_f), x3.dtype),
        grid_spec=pltpu.PrefetchScalarGridSpec(
            num_scalar_prefetch=0,
            grid=(n, n_tiles),
            in_specs=[
                # constant index_map -> scale/shift are not re-DMA'd each step
                pl.BlockSpec((c_f, 1), lambda i, t: (0, 0)),
                pl.BlockSpec((c_f, 1), lambda i, t: (0, 0)),
                _streaming_spec(c_f, tile, x_idx, total_steps),
            ],
            out_specs=pl.BlockSpec((1, c_f, tile), x_idx),
        ),
        compiler_params=pltpu.CompilerParams(
            dimension_semantics=("parallel", "parallel"),
            vmem_limit_bytes=vmem_limit,
        ),
    )(scale_f, shift_f, x3)


# ---------------------------------------------------------------------------
# Module wrapper (training-mode forward, matching the PyTorch defaults)
# ---------------------------------------------------------------------------

class RecurrentBatchNorm3dPallas:
    """JAX/Pallas equivalent of td_r2n2 Recurrent_BatchNorm3d (training mode)."""

    def __init__(self, num_features, T_max, eps=1e-5, momentum=0.1, affine=True):
        self.num_features = num_features
        self.T_max = T_max
        self.eps = float(eps)
        self.momentum = float(momentum)
        self.affine = affine
        # reset_parameters(): weight.fill_(0.1), bias.zero_()
        if affine:
            self.weight = jnp.full((num_features,), 0.1, dtype=jnp.float32)
            self.bias = jnp.zeros((num_features,), dtype=jnp.float32)
        else:
            self.weight = jnp.ones((num_features,), dtype=jnp.float32)
            self.bias = jnp.zeros((num_features,), dtype=jnp.float32)
        # per-timestep running buffers: mean=0, var=1
        self.running_mean = [jnp.zeros((num_features,), jnp.float32)
                             for _ in range(T_max)]
        self.running_var = [jnp.ones((num_features,), jnp.float32)
                            for _ in range(T_max)]

    def __call__(self, x, time):
        # x: (N, C, D, H, W) -- PyTorch NCDHW layout
        if x.ndim != 5:
            raise ValueError(f"expected 5D input (got {x.ndim}D input)")
        if time >= self.T_max:
            time = self.T_max - 1

        n, c, d, h, w = x.shape
        dhw = d * h * w
        m = n * dhw

        itemsize = jnp.dtype(x.dtype).itemsize
        vmem_limit, block_budget = _hw_budgets()

        # Sublane folding for small channel counts.
        k = _fold_factor(c, dhw, itemsize)

        # Pad DHW to a multiple of k*128: zeros contribute 0 to sum/sum(x*x)
        # and the true element count m is used for the denominators; padding
        # keeps every tile 128-lane aligned (unmasked stores).
        align = k * 128
        dhw_p = ((dhw + align - 1) // align) * align
        x3 = x.reshape(n, c, dhw)
        if dhw_p != dhw:
            x3 = jnp.pad(x3, ((0, 0), (0, 0), (0, dhw_p - dhw)))
        c_f = c * k
        dhw_f = dhw_p // k
        x3 = x3.reshape(n, c_f, dhw_f)      # free reshape, no HBM transpose

        tile = _pick_tile(dhw_f, c_f, itemsize, block_budget)
        n_tiles = dhw_f // tile

        # Split the reduction sweep into 2 parallel slabs when possible so the
        # stats pass can be sharded across both TensorCores on v7x.
        split_p = 2 if (n_tiles >= 2 and n_tiles % 2 == 0) else 1

        # Pass 1: per-(n, slab) per-folded-channel sum / sum(x*x).
        sums, sumsqs = _batch_stats(x3, tile, split_p, vmem_limit)
        s = jnp.sum(sums, axis=0).reshape(c, k).sum(axis=1)       # (C,)
        sq = jnp.sum(sumsqs, axis=0).reshape(c, k).sum(axis=1)    # (C,)
        mean = s / m
        # TODO(synk): E[x^2]-E[x]^2 in f32 can cancel for |mean| >> std inputs;
        # a shifted-sum / Welford accumulation would be more robust for training.
        var = jnp.maximum(sq / m - mean * mean, 0.0)   # biased variance
        inv_std = lax.rsqrt(var + jnp.float32(self.eps))
        scale = self.weight * inv_std                  # gamma / sqrt(var+eps)
        shift = self.bias - mean * scale               # beta - mean*scale

        # Pass 2: y = x * scale + shift (per folded-channel row).
        scale_f = jnp.repeat(scale, k).reshape(c_f, 1).astype(jnp.float32)
        shift_f = jnp.repeat(shift, k).reshape(c_f, 1).astype(jnp.float32)
        y3 = _normalize(x3, scale_f, shift_f, tile, vmem_limit)
        y3 = y3.reshape(n, c, dhw_p)[:, :, :dhw]
        y = y3.reshape(n, c, d, h, w)

        # Running-stat side effect (training mode): unbiased batch variance.
        mom = self.momentum
        var_unbiased = var * (m / max(m - 1, 1))
        self.running_mean[time] = (1.0 - mom) * self.running_mean[time] + mom * mean
        self.running_var[time] = (1.0 - mom) * self.running_var[time] + mom * var_unbiased

        return y

        # TODO(synk): eval-mode path (training=False: normalize with the
        # per-timestep running stats) is a trivial variant of the normalize
        # pass; not exercised here since the module default is training.


# ---------------------------------------------------------------------------
# Reference + self-test
# ---------------------------------------------------------------------------

def _reference_bn_train(x, weight, bias, eps):
    # Pure-JAX reference matching torch.nn.functional.batch_norm(training=True)
    mean = jnp.mean(x, axis=(0, 2, 3, 4), keepdims=True)
    var = jnp.mean((x - mean) ** 2, axis=(0, 2, 3, 4), keepdims=True)
    w = weight.reshape(1, -1, 1, 1, 1)
    b = bias.reshape(1, -1, 1, 1, 1)
    return (x - mean) * lax.rsqrt(var + eps) * w + b


if __name__ == "__main__":
    key = jax.random.PRNGKey(0)
    N, C, D, H, W = 2, 4, 8, 8, 8
    T_max = 8
    x = jax.random.normal(key, (N, C, D, H, W), dtype=jnp.float32)

    bn = RecurrentBatchNorm3dPallas(num_features=C, T_max=T_max)
    y = bn(x, time=3)
    y = jax.block_until_ready(y)

    # Output check.
    y_ref = _reference_bn_train(x, bn.weight, bn.bias, bn.eps)
    assert y.shape == x.shape and y.dtype == x.dtype
    assert jnp.allclose(y, y_ref, atol=1e-5, rtol=1e-5), "output mismatch vs reference"

    # Running-stat side-effect check (momentum=0.1, unbiased batch variance).
    M = N * D * H * W
    mean_ref = jnp.mean(x, axis=(0, 2, 3, 4))
    var_b_ref = jnp.mean((x - mean_ref.reshape(1, C, 1, 1, 1)) ** 2, axis=(0, 2, 3, 4))
    var_u_ref = var_b_ref * (M / (M - 1))
    rm_ref = 0.9 * jnp.zeros((C,)) + 0.1 * mean_ref
    rv_ref = 0.9 * jnp.ones((C,)) + 0.1 * var_u_ref
    assert jnp.allclose(bn.running_mean[3], rm_ref, atol=1e-5, rtol=1e-5)
    assert jnp.allclose(bn.running_var[3], rv_ref, atol=1e-5, rtol=1e-5)

    print("KERNEL_OK")
</pallas_src>

<mosaic_0001>
module attributes {stable_mosaic.version = 11 : i64} {
  func.func @_stats_kernel(%arg0: i32, %arg1: i32, %arg2: i32, %arg3: memref<1x8x256xf32, #tpu.memory_space<vmem>>, %arg4: memref<1x8x1xf32, #tpu.memory_space<vmem>>, %arg5: memref<1x8x1xf32, #tpu.memory_space<vmem>>, %arg6: memref<8x256xf32, #tpu.memory_space<vmem>>, %arg7: memref<8x256xf32, #tpu.memory_space<vmem>>) attributes {dimension_semantics = [#tpu.dimension_semantics<parallel>, #tpu.dimension_semantics<parallel>, #tpu.dimension_semantics<arbitrary>], iteration_bounds = array<i64: 2, 1, 1>, scalar_prefetch = 0 : i64, scratch_operands = 2 : i64, tpu.core_type = #tpu.core_type<tc>, window_params = [{transform_indices = @transform_0, window_bounds = array<i64: 1, 8, 256>}, {transform_indices = @transform_1, window_bounds = array<i64: 1, 8, 1>}, {transform_indices = @transform_2, window_bounds = array<i64: 1, 8, 1>}]} {
    %c0_i32 = arith.constant 0 : i32
    %0 = arith.cmpi eq, %arg2, %c0_i32 : i32
    %1 = arith.extui %0 : i1 to i32
    %c0_i32_0 = arith.constant 0 : i32
    %2 = arith.cmpi ne, %1, %c0_i32_0 : i32
    scf.if %2 {
      %cst = arith.constant 0.000000e+00 : f32
      %15 = vector.broadcast %cst : f32 to vector<8x256xf32>
      %c0_13 = arith.constant 0 : index
      %c0_14 = arith.constant 0 : index
      %16 = vector.load %arg6[%c0_13, %c0_14] : memref<8x256xf32, #tpu.memory_space<vmem>>, vector<8x256xf32>
      tpu.vector_store %arg6[%c0_13, %c0_14], %15 {strides = array<i32>} : memref<8x256xf32, #tpu.memory_space<vmem>>, vector<8x256xf32>,
      %cst_15 = arith.constant 0.000000e+00 : f32
      %17 = vector.broadcast %cst_15 : f32 to vector<8x256xf32>
      %c0_16 = arith.constant 0 : index
      %c0_17 = arith.constant 0 : index
      %18 = vector.load %arg7[%c0_16, %c0_17] : memref<8x256xf32, #tpu.memory_space<vmem>>, vector<8x256xf32>
      tpu.vector_store %arg7[%c0_16, %c0_17], %17 {strides = array<i32>} : memref<8x256xf32, #tpu.memory_space<vmem>>, vector<8x256xf32>,
    } else {
    }
    %c0 = arith.constant 0 : index
    %c0_1 = arith.constant 0 : index
    %c0_2 = arith.constant 0 : index
    %3 = vector.load %arg3[%c0, %c0_1, %c0_2] : memref<1x8x256xf32, #tpu.memory_space<vmem>>, vector<1x8x256xf32>
    %4 = vector.shape_cast %3 : vector<1x8x256xf32> to vector<8x256xf32>
    %c0_3 = arith.constant 0 : index
    %c0_4 = arith.constant 0 : index
    %5 = vector.load %arg6[%c0_3, %c0_4] : memref<8x256xf32, #tpu.memory_space<vmem>>, vector<8x256xf32>
    %6 = arith.addf %5, %4 : vector<8x256xf32>
    %c0_5 = arith.constant 0 : index
    %c0_6 = arith.constant 0 : index
    %7 = vector.load %arg6[%c0_5, %c0_6] : memref<8x256xf32, #tpu.memory_space<vmem>>, vector<8x256xf32>
    tpu.vector_store %arg6[%c0_5, %c0_6], %6 {strides = array<i32>} : memref<8x256xf32, #tpu.memory_space<vmem>>, vector<8x256xf32>,
    %c0_7 = arith.constant 0 : index
    %c0_8 = arith.constant 0 : index
    %8 = vector.load %arg7[%c0_7, %c0_8] : memref<8x256xf32, #tpu.memory_space<vmem>>, vector<8x256xf32>
    %9 = arith.mulf %4, %4 : vector<8x256xf32>
    %10 = arith.addf %8, %9 : vector<8x256xf32>
    %c0_9 = arith.constant 0 : index
    %c0_10 = arith.constant 0 : index
    %11 = vector.load %arg7[%c0_9, %c0_10] : memref<8x256xf32, #tpu.memory_space<vmem>>, vector<8x256xf32>
    tpu.vector_store %arg7[%c0_9, %c0_10], %10 {strides = array<i32>} : memref<8x256xf32, #tpu.memory_space<vmem>>, vector<8x256xf32>,
    %c0_i32_11 = arith.constant 0 : i32
    %12 = arith.cmpi eq, %arg2, %c0_i32_11 : i32
    %13 = arith.extui %12 : i1 to i32
    %c0_i32_12 = arith.constant 0 : i32
    %14 = arith.cmpi ne, %13, %c0_i32_12 : i32
    scf.if %14 {
      %c0_13 = arith.constant 0 : index
      %c0_14 = arith.constant 0 : index
      %15 = vector.load %arg6[%c0_13, %c0_14] : memref<8x256xf32, #tpu.memory_space<vmem>>, vector<8x256xf32>
      %cst = arith.constant dense<0.000000e+00> : vector<8xf32>
      %16 = vector.multi_reduction <add>, %15, %cst [1] : vector<8x256xf32> to vector<8xf32>
      %17 = vector.shape_cast %16 : vector<8xf32> to vector<8x1xf32>
      %c0_15 = arith.constant 0 : index
      %c0_16 = arith.constant 0 : index
      %c0_17 = arith.constant 0 : index
      %18 = vector.load %arg4[%c0_15, %c0_16, %c0_17] : memref<1x8x1xf32, #tpu.memory_space<vmem>>, vector<1x8x1xf32>
      %19 = vector.shape_cast %18 : vector<1x8x1xf32> to vector<8x1xf32>
      %20 = vector.shape_cast %17 : vector<8x1xf32> to vector<1x8x1xf32>
      tpu.vector_store %arg4[%c0_15, %c0_16, %c0_17], %20 {strides = array<i32>} : memref<1x8x1xf32, #tpu.memory_space<vmem>>, vector<1x8x1xf32>,
      %c0_18 = arith.constant 0 : index
      %c0_19 = arith.constant 0 : index
      %21 = vector.load %arg7[%c0_18, %c0_19] : memref<8x256xf32, #tpu.memory_space<vmem>>, vector<8x256xf32>
      %cst_20 = arith.constant dense<0.000000e+00> : vector<8xf32>
      %22 = vector.multi_reduction <add>, %21, %cst_20 [1] : vector<8x256xf32> to vector<8xf32>
      %23 = vector.shape_cast %22 : vector<8xf32> to vector<8x1xf32>
      %c0_21 = arith.constant 0 : index
      %c0_22 = arith.constant 0 : index
      %c0_23 = arith.constant 0 : index
      %24 = vector.load %arg5[%c0_21, %c0_22, %c0_23] : memref<1x8x1xf32, #tpu.memory_space<vmem>>, vector<1x8x1xf32>
      %25 = vector.shape_cast %24 : vector<1x8x1xf32> to vector<8x1xf32>
      %26 = vector.shape_cast %23 : vector<8x1xf32> to vector<1x8x1xf32>
      tpu.vector_store %arg5[%c0_21, %c0_22, %c0_23], %26 {strides = array<i32>} : memref<1x8x1xf32, #tpu.memory_space<vmem>>, vector<1x8x1xf32>,
    } else {
    }
    return
  }
  func.func @transform_0(%arg0: i32, %arg1: i32, %arg2: i32) -> (i32, i32, i32) {
    %c1_i32 = arith.constant 1 : i32
    %0 = arith.muli %arg1, %c1_i32 : i32
    %1 = arith.addi %0, %arg2 : i32
    %c0_i32 = arith.constant 0 : i32
    %c0_i32_0 = arith.constant 0 : i32
    return %arg0, %c0_i32, %1 : i32, i32, i32
  }
  func.func @transform_1(%arg0: i32, %arg1: i32, %arg2: i32) -> (i32, i32, i32) {
    %c1_i32 = arith.constant 1 : i32
    %0 = arith.muli %arg0, %c1_i32 : i32
    %1 = arith.addi %0, %arg1 : i32
    %c0_i32 = arith.constant 0 : i32
    %c0_i32_0 = arith.constant 0 : i32
    %c0_i32_1 = arith.constant 0 : i32
    return %1, %c0_i32, %c0_i32_0 : i32, i32, i32
  }
  func.func @transform_2(%arg0: i32, %arg1: i32, %arg2: i32) -> (i32, i32, i32) {
    %c1_i32 = arith.constant 1 : i32
    %0 = arith.muli %arg0, %c1_i32 : i32
    %1 = arith.addi %0, %arg1 : i32
    %c0_i32 = arith.constant 0 : i32
    %c0_i32_0 = arith.constant 0 : i32
    %c0_i32_1 = arith.constant 0 : i32
    return %1, %c0_i32, %c0_i32_0 : i32, i32, i32
  }
}

</mosaic_0001>

<bundles_post_ra>
// kernel: tpu_custom_call.1
= control target key start
LH: loop header
LB: loop body
LE: loop exit
PB: predicated region body
PF: predicated region fallthrough
CT: control target
= control target key end

     0   :  { %8 = vsyncpa [#allocation5], 0  ;;  %s625_s0 = inlined_call_operand.hbm [shape: f32[2,8,256], index: 0, kind: input, shape index: {}]   ;;  %s626_s1 = inlined_call_operand.vmem [shape: f32[2,8,1], index: 1, kind: output, shape index: {0}]   ;;  %s627_s2 = inlined_call_operand.vmem [shape: f32[2,8,1], index: 2, kind: output, shape index: {1}]  }
   0x1   :  { %10 = vsyncpa [#allocation5 + $0x1], 0  ;;  %s534_s9 = smov 0   ;;  %s536_s10 = smov 0  }
   0x2   :  { %s538_s11 = smov 0   ;;  %s540_s12 = smov 0  }
   0x3   :  { %s542_s13 = smov 0   ;;  %s544_s14 = smov 0  }
   0x4 LB: > { %s368_s15 = sadd.s32 4294967295, %s517_s14   ;;  %s35_s16 = sadd.s32 1, %s513_s13  ;;  %s517_s14 = sphi %s544_s14, %s16_s14   ;;  %s513_s13 = sphi %s542_s13, %s634_s13   ;;  %s509_s12 = sphi %s540_s12, %s633_s12   ;;  %s505_s11 = sphi %s538_s11, %s632_s11   ;;  %s501_s10 = sphi %s536_s10, %s631_s10   ;;  %s497_s9 = sphi %s534_s9, %s630_s9  }
   0x5   : > { %p37_p0 = scmp.ge.s32.totalorder %s35_s16, 2  ;;  %s46_s17 = sadd.s32 1, %s505_s11 }
   0x6   : > { %p53_p1 = scmp.ne.s32.totalorder %s505_s11, %s501_s10  ;;  %p54_p2 = scmp.eq.s32.totalorder %s517_s14, 0 }
   0x7   : > { %s636_s16 = smov (%p37_p0, %s35_s16), 0  ;;  %p59_p4 = scmp.ne.s32.totalorder %s501_s10, %s497_s9 }
   0x8   : > { %p570_p3 = por %p54_p2, %p53_p1  ;;  %s41_s19 = ssub.s32 %s513_s13, %s636_s16 }
   0x9   : > { %p60_p5 = scmp.eq.s32.totalorder %s368_s15, 0  ;;  %p44_p6 = scmp.eq.s32.totalorder %s41_s19, 0 }
   0xa   : > { %p388_p8 = scmp.lt.s32.totalorder %s517_s14, 2  ;;  %s139_s22 = sand.u32 1, %s505_s11  }
   0xb   : > { %p577_p7 = por %p60_p5, %p59_p4  ;;  %s381_s23 = sshll.u32 %s513_s13, 4 }
   0xc   : > { %s583_s21 = scalar_select %p44_p6, %s505_s11, %s46_s17  }
   0xd   : > { %s372_s24 = sshll.u32 %s139_s22, 4  ;;  %s151_s27 = scalar_lea.hbm %s625_s0, %s381_s23 }
   0xe   : > { %s153_s28 = sshll.u32 %s151_s27, 4  ;;  %s143_s29 = scalar_lea.vmem [#allocation4], %s372_s24  ;;  %s154_s28 = int_to_ptr.hbm [resolvable:$true] %s153_s28 }
   0xf   : > { %s155_s30 = sshll.u32 %s143_s29, 4  ;;  %p385_p9 = pnand %p388_p8, %p570_p3  ;;  %s156_s30 = int_to_ptr.vmem [resolvable:$true] %s155_s30 }
  0x10   : > { %p375_p10 = scmp.ge.s32.totalorder %s517_s14, 1  ;;  %p160_p11 = scmp.lt.s32.totalorder %s517_s14, 3 }
  0x11   : > { %s140_s3 = scalar_lea.sflag [#allocation5], %s139_s22 }
  0x12   : > { %387 = dma.hbm_to_vmem [thread:$0]  (!%p385_p9), %s154_s28, 256, %s156_s30, %s140_s3  }
  0x13   : > { %p161_p12 = pnand %p375_p10, %p160_p11 }
  0x14   : > { %s166_s4 = sand.u32 (!%p161_p12), 1, %s501_s10  }
  0x15   : > { %164 = sbr.rel (%p161_p12) target bundleno = 155 (0x9b), region = 24  ;;  %s376_s5 = sshll.u32 (!%p161_p12), %s166_s4, 4 }
  0x16   : > { %s167_s6 = scalar_lea.sflag (!%p161_p12), [#allocation5], %s166_s4  ;;  %s170_s7 = scalar_lea.vmem (!%p161_p12), [#allocation4], %s376_s5 }
  0x1a   : > { %492 = dma.done.wait (%p577_p7), %s167_s6, 256  }
  0x1b   : > { %494 = vsyncadd (%p577_p7), %s167_s6, 4294967040  ;;  %v219_v0 = vld [vmem:[%s170_s7] sm:$0xff]  ;;  %v220_v1 = vld [vmem:[%s170_s7 + $0x8] sm:$0xff]  ;;  %p200_p13 = scmp.lt.s32.totalorder %s509_s12, 1  ;;  %vm243_vm0 = vcmask 7168  }
  0x1c   : > { %v240_v2 = vadd.f32 %v220_v1, %v219_v0  ;;  %v230_v3 = vmul.f32 %v220_v1, %v220_v1  ;;  %v229_v4 = vmul.f32 %v219_v0, %v219_v0 }
  0x1d   : > { %s638_s12 = smov (!%p200_p13, %s509_s12), 1 }
  0x1e   : > { %241 = vadd.xlane.f32.xlu0 %v240_v2  ;;  %v247_v5 = vadd.f32 %v230_v3, %v229_v4  ;;  %s377_s8 = sshll.u32 %s638_s12, 3 }
  0x1f   : > { %s203_s17 = scalar_lea.vmem %s626_s1, %s377_s8  ;;  %s209_s20 = scalar_lea.vmem %s627_s2, %s377_s8 }
  0x26   : > { %248 = vadd.xlane.f32.xlu0 %v247_v5 }
  0x91   : > { %v242_v6 = vpop.xlane.xlu0 %241 }
  0x92   : > { %244 = vst.msk [vmem:[%s203_s17] sm:$0xff] %vm243_vm0, %v242_v6 }
  0x99   : > { %v249_v7 = vpop.xlane.xlu0 %248 }
  0x9a   : > { %250 = vst.msk [vmem:[%s209_s20] sm:$0xff] %vm243_vm0, %v249_v7 }
  0x9b PF: > { %s16_s14 = sadd.s32 1, %s517_s14   ;;  %s630_s9 = smov %s501_s10 }
  0x9c   : > { %p13_p0 = scmp.ge.s32.totalorder %s16_s14, 4   ;;  %s631_s10 = smov %s505_s11 }
  0x9d   : > { %s632_s11 = smov %s583_s21  ;;  %s633_s12 = smov %s513_s13 }
  0x9e   : > { %s634_s13 = smov %s636_s16  ;;  %15 = sbr.rel (!%p13_p0) target bundleno = 4 (0x4), region = 84 }
  0xa3   :  { %290 = vsyncpa [#allocation5], 1 }
  0xa4   :  { %292 = vsyncpa [#allocation5 + $0x1], 1 }

</bundles_post_ra>
